<compile_context>
chip_gen: v6e
topology: v6e:2x2x1
jax: 0.10.0
libtpu: 0.0.40
codegen_flags: <defaults>
</compile_context>

<pallas_src>
import jax
import jax.numpy as jnp
from jax.experimental import pallas as pl
from jax.experimental.pallas import tpu as pltpu

WORDS_NUM = 2   # vocab size  (from the module)
WORDS_DIM = 5   # embedding dim (from the module)

_LANES = 128
_SUBLANES = 8


def _embed_kernel(idx_ref, emb_ref, out_ref):
    # idx_ref: (TN, 1)      int32   -- token ids for this tile
    # emb_ref: (V,  D_pad)  float32 -- whole (padded) embedding table, VMEM-resident
    # out_ref: (TN, D_pad)  float32 -- lane-dense output tile
    idx = idx_ref[...]                      # (TN, 1)
    emb = emb_ref[...]                      # (V, D_pad)
    v_rows = emb.shape[0]

    # Pure-VPU gather for a tiny vocab: chain of broadcasted selects.
    # Row v is selected where idx == v; unmatched (out-of-range) ids fall
    # through to row 0.
    result = jnp.broadcast_to(emb[0:1, :], out_ref.shape)      # (TN, D_pad)
    for v in range(1, v_rows):                                  # static unroll (V=2 -> 1 select)
        result = jnp.where(idx == v, emb[v:v + 1, :], result)
    out_ref[...] = result


def embedding_forward(x, emb_table, *, tn_cap=1024):
    """x: int array (B, S); emb_table: (V, D) float32 -> (B, S, D) float32."""
    B, S = x.shape
    V, D = emb_table.shape
    N = B * S

    # Lane-dense output: pad embedding dim up to a multiple of 128.
    d_pad = ((D + _LANES - 1) // _LANES) * _LANES

    # Token-tile size: multiple of 8, capped at tn_cap (itself a multiple of 8).
    tn = min(tn_cap, max(_SUBLANES, ((N + _SUBLANES - 1) // _SUBLANES) * _SUBLANES))
    n_pad = ((N + tn - 1) // tn) * tn

    idx = x.reshape(N).astype(jnp.int32)
    if n_pad != N:
        idx = jnp.pad(idx, (0, n_pad - N))
    idx = idx.reshape(n_pad, 1)                                        # (N_pad, 1)

    emb_pad = emb_table.astype(jnp.float32)
    if d_pad != D:
        emb_pad = jnp.pad(emb_pad, ((0, 0), (0, d_pad - D)))           # (V, D_pad)

    grid = (n_pad // tn,)

    out = pl.pallas_call(
        _embed_kernel,
        out_shape=jax.ShapeDtypeStruct((n_pad, d_pad), jnp.float32),
        grid=grid,
        in_specs=[
            pl.BlockSpec((tn, 1), lambda i: (i, 0)),       # indices: tile over tokens
            pl.BlockSpec((V, d_pad), lambda i: (0, 0)),    # table: whole array, resident
        ],
        out_specs=pl.BlockSpec((tn, d_pad), lambda i: (i, 0)),
        compiler_params=pltpu.CompilerParams(
            dimension_semantics=("parallel",)),            # shard grid across TCs (v7x)
    )(idx, emb_pad)

    return out[:N, :D].reshape(B, S, D)


if __name__ == "__main__":
    key = jax.random.PRNGKey(0)
    k_emb, k_idx = jax.random.split(key)

    # nn.Embedding default init: N(0, 1)
    emb_table = jax.random.normal(k_emb, (WORDS_NUM, WORDS_DIM), dtype=jnp.float32)

    # Small input consistent with the forward: integer token indices (batch=2, seq=8)
    x = jax.random.randint(k_idx, (2, 8), 0, WORDS_NUM, dtype=jnp.int32)

    out = embedding_forward(x, emb_table)
    out = jax.block_until_ready(out)

    # Correctness check against a plain-JAX gather reference.
    ref = emb_table[x]
    assert out.shape == (2, 8, WORDS_DIM)
    assert jnp.allclose(out, ref, atol=1e-6), "mismatch vs reference gather"

    print("KERNEL_OK")
</pallas_src>

<mosaic_0001>
module attributes {stable_mosaic.version = 11 : i64} {
  func.func @_embed_kernel(%arg0: i32, %arg1: memref<16x1xi32, #tpu.memory_space<vmem>>, %arg2: memref<2x128xf32, #tpu.memory_space<vmem>>, %arg3: memref<16x128xf32, #tpu.memory_space<vmem>>) attributes {dimension_semantics = [#tpu.dimension_semantics<parallel>], iteration_bounds = array<i64: 1>, scalar_prefetch = 0 : i64, scratch_operands = 0 : i64, tpu.core_type = #tpu.core_type<tc>, window_params = [{transform_indices = @transform_0, window_bounds = array<i64: 16, 1>}, {pipeline_mode = #tpu.pipeline_mode<synchronous>, transform_indices = @transform_1, window_bounds = array<i64: 2, 128>}, {transform_indices = @transform_2, window_bounds = array<i64: 16, 128>}]} {
    %c0 = arith.constant 0 : index
    %c0_0 = arith.constant 0 : index
    %0 = vector.load %arg1[%c0, %c0_0] : memref<16x1xi32, #tpu.memory_space<vmem>>, vector<16x1xi32>
    %c0_1 = arith.constant 0 : index
    %c0_2 = arith.constant 0 : index
    %1 = vector.load %arg2[%c0_1, %c0_2] : memref<2x128xf32, #tpu.memory_space<vmem>>, vector<2x128xf32>
    %2 = vector.extract_strided_slice %1 {offsets = [0, 0], sizes = [1, 128], strides = [1, 1]} : vector<2x128xf32> to vector<1x128xf32>
    %3 = vector.shape_cast %2 : vector<1x128xf32> to vector<1x128xf32>
    %4 = vector.broadcast %3 : vector<1x128xf32> to vector<16x128xf32>
    %c1_i32 = arith.constant 1 : i32
    %5 = vector.broadcast %c1_i32 : i32 to vector<16x1xi32>
    %6 = arith.cmpi eq, %0, %5 : vector<16x1xi32>
    %7 = vector.extract_strided_slice %1 {offsets = [1, 0], sizes = [1, 128], strides = [1, 1]} : vector<2x128xf32> to vector<1x128xf32>
    %8 = vector.shape_cast %6 : vector<16x1xi1> to vector<16x1xi1>
    %9 = vector.broadcast %8 : vector<16x1xi1> to vector<16x128xi1>
    %10 = vector.shape_cast %7 : vector<1x128xf32> to vector<1x128xf32>
    %11 = vector.broadcast %10 : vector<1x128xf32> to vector<16x128xf32>
    %12 = arith.select %9, %11, %4 : vector<16x128xi1>, vector<16x128xf32>
    %c0_3 = arith.constant 0 : index
    %c0_4 = arith.constant 0 : index
    %13 = vector.load %arg3[%c0_3, %c0_4] : memref<16x128xf32, #tpu.memory_space<vmem>>, vector<16x128xf32>
    tpu.vector_store %arg3[%c0_3, %c0_4], %12 {strides = array<i32>} : memref<16x128xf32, #tpu.memory_space<vmem>>, vector<16x128xf32>,
    return
  }
  func.func @transform_0(%arg0: i32) -> (i32, i32) {
    %c0_i32 = arith.constant 0 : i32
    %c0_i32_0 = arith.constant 0 : i32
    return %arg0, %c0_i32 : i32, i32
  }
  func.func @transform_1(%arg0: i32) -> (i32, i32) {
    %c0_i32 = arith.constant 0 : i32
    %c0_i32_0 = arith.constant 0 : i32
    %c0_i32_1 = arith.constant 0 : i32
    return %c0_i32, %c0_i32_0 : i32, i32
  }
  func.func @transform_2(%arg0: i32) -> (i32, i32) {
    %c0_i32 = arith.constant 0 : i32
    %c0_i32_0 = arith.constant 0 : i32
    return %arg0, %c0_i32 : i32, i32
  }
}

</mosaic_0001>

<bundles_post_ra>
// kernel: tpu_custom_call.1
= control target key start
LH: loop header
LB: loop body
LE: loop exit
PB: predicated region body
PF: predicated region fallthrough
CT: control target
= control target key end

     0   :  { %v82_v2 = vmov 0   ;;  %s113_s0 = inlined_call_operand.vmem [shape: s32[16,1], index: 0, kind: input, shape index: {}]   ;;  %s114_s1 = inlined_call_operand.vmem [shape: f32[2,128], index: 1, kind: input, shape index: {}]   ;;  %s115_s2 = inlined_call_operand.hbm [shape: f32[16,128], index: 2, kind: output, shape index: {}]  }
   0x1   :  { %v12_v0 = vld [vmem:[%s113_s0] sm:$0xff]  ;;  %v13_v1 = vld [vmem:[%s113_s0 + $0x8] sm:$0xff]  ;;  %59 = vset.pattern.permute.xlu0 %v82_v2 }
   0x2   :  { %vm19_vm0 = vcmp.eq.s32.totalorder %v12_v0, 1  ;;  %vm20_vm1 = vcmp.eq.s32.totalorder %v13_v1, 1 }
   0x3   :  { %7 = vsyncpa [#allocation3], 0  ;;  %v21_v3 = vsel %vm19_vm0, 1, %v82_v2  ;;  %v22_v4 = vsel %vm20_vm1, 1, %v82_v2  ;;  %v15_v5 = vlaneseq  ;;  %v14_v9 = vld [vmem:[%s114_s1] sm:$0x3] }
   0x4   :  { %24 = vperm.xlu0 %59, %v21_v3   ;;  %s83_s0 = smov [#allocation2]  }
   0x5   :  { %v16_v6 = vshrl.u32 %v15_v5, 7  ;;  %s44_s15 = sshll.u32 %s83_s0, 4  ;;  %s45_s15 = int_to_ptr.vmem [resolvable:$true] %s44_s15 }
   0x6   :  { %s60_s16 = scalar_lea.vmem %s45_s15, 256  ;;  %p65_p1 = scmp.lt.s32.totalorder %s45_s15, %s45_s15 }
   0x7   :  { %v17_v7 = vsub.s32 0, %v16_v6  ;;  %v33_v8 = vsub.s32 1, %v16_v6  ;;  %p61_p0 = scmp.ne.s32.totalorder %s45_s15, %s60_s16  ;;  %p66_p2 = scmp.lt.s32.totalorder %s60_s16, %s60_s16 }
   0x8   :  { %27 = vperm.xlu0 %59, %v22_v4  }
   0x9   :  { %v18_v10 = vrot.slane %v14_v9, %v17_v7  ;;  %v34_v11 = vrot.slane %v14_v9, %v33_v8  ;;  %p67_p3 = por %p66_p2, %p65_p1 }
   0xb   :  { %p68_p4 = pnand %p67_p3, %p61_p0 }
  0x7f   :  { %v25_v12 = vpop.permute.xlu0 %24 }
  0x80   :  { %vm29_vm2 = vcmp.eq.s32.totalorder %v25_v12, 1 }
  0x81   :  { %v35_v13 = vsel %vm29_vm2, %v34_v11, %v18_v10 }
  0x82   :  { %37 = vst [vmem:[#allocation2] sm:$0xff] %v35_v13 }
  0x83   :  { %v28_v14 = vpop.permute.xlu0 %27 }
  0x84   :  { %vm30_vm3 = vcmp.eq.s32.totalorder %v28_v14, 1 }
  0x85   :  { %v36_v15 = vsel %vm30_vm3, %v34_v11, %v18_v10 }
  0x86   :  { %38 = vst [vmem:[#allocation2 + $0x8] sm:$0xff] %v36_v15 }
  0x87   :  { %71 = shalt.err (!%p68_p4)
}
  0x88   :  { %s84_s1 = smov 128   ;;  %s85_s17 = smov 8  }
  0x89   :  { %50 = dma.vmem_to_hbm [thread:$0]  %s45_s15, 256, %s115_s2, [#allocation3], %s84_s1, %s84_s1, %s85_s17  }
  0x8a   :  { %80 = dma.done.wait [#allocation3], 256  }
  0x8b   :  { %81 = vsyncadd [#allocation3], 4294967040 }
  0x8c   :  { %54 = vsyncpa [#allocation3], 1 }

</bundles_post_ra>
